<compile_context>
chip_gen: v7x
topology: tpu7x:2x2x1
jax: 0.10.0
libtpu: 0.0.40
codegen_flags: <defaults>
</compile_context>

<pallas_src>
import functools

import jax
import jax.numpy as jnp
from jax.experimental import pallas as pl
from jax.experimental.pallas import tpu as pltpu


def _round_up(x, m):
    return (x + m - 1) // m * m


def graph_encoder_kernel(ones_col, adj_ref, emb_ref, self_ref, w_self_ref,
                         w_neigh_ref, b_ref, out_ref, acc_ref):
    """Fused weighted-mean neighbor aggregation + concat-Linear + ReLU.

    Grid: (N_tiles, V_tiles); V (axis 1) is the reduction axis.
      adj_ref    : [TN, TV]   bf16   adjacency tile (rows already gathered for the batch)
      emb_ref    : [TV, Daug] bf16   embedding tile, column `ones_col` == 1.0
      self_ref   : [TN, Dp]   f32    self features (resident across the reduction)
      w_self_ref : [Dp, Dp]   f32
      w_neigh_ref: [Daug, Dp] f32    (rows >= D are zero, incl. the ones column row)
      b_ref      : [1, Dp]    f32
      out_ref    : [TN, Dp]   f32
      acc_ref    : [TN, Daug] f32    VMEM accumulator (neigh sums + row degree in ones_col)
    """
    k = pl.program_id(1)

    @pl.when(k == 0)
    def _init():
        acc_ref[...] = jnp.zeros_like(acc_ref)

    # MXU: accumulates both the weighted neighbor-feature sums and (via the ones column
    # in emb) the row degree, in one bf16 matmul with f32 accumulation.
    acc_ref[...] += jnp.dot(adj_ref[...], emb_ref[...],
                            preferred_element_type=jnp.float32)

    @pl.when(k == pl.num_programs(1) - 1)
    def _finalize():
        acc = acc_ref[...]                                   # [TN, Daug]
        denom = acc[:, ones_col:ones_col + 1]                # [TN, 1]  row degree
        inv = pl.reciprocal(jnp.maximum(denom, 1e-12), approx=True)   # EUP
        neigh = acc * inv                                    # weighted mean
        # concat([self, neigh]) @ W.T + b == self @ W_self + neigh @ W_neigh + b
        combined = (
            jnp.dot(self_ref[...], w_self_ref[...], preferred_element_type=jnp.float32)
            + jnp.dot(neigh, w_neigh_ref[...], preferred_element_type=jnp.float32)
            + b_ref[...]
        )
        out_ref[...] = jnp.maximum(combined, 0.0).astype(out_ref.dtype)


def graph_encoder_forward(video_nodes, video_embeddings, adj_weights, w1, b1,
                          with_graph=True):
    """JAX wrapper mirroring GraphEncoder.forward.

    video_nodes      : [N] int32 indices into the video table
    video_embeddings : [V, D] float32
    adj_weights      : [V, V] float32 dense weighted adjacency (row i = neighbors of i)
    w1               : [D, 2D] float32 (PyTorch nn.Linear(2D, D).weight layout)
    b1               : [D]     float32
    """
    if not with_graph:
        # with_graph == False: plain embedding lookup (pure glue, no hot compute).
        return video_embeddings[video_nodes]

    V, D = video_embeddings.shape
    N = video_nodes.shape[0]

    # ---- tile sizes / padded shapes (128-lane aligned, VMEM-safe on v5e/v6e/v7x) ----
    TN = min(256, _round_up(N, 8))
    TV = min(1024, _round_up(V, 128))
    N_pad = _round_up(N, TN)
    V_pad = _round_up(V, TV)
    D_pad = _round_up(D, 128)            # output / self-feature width
    D_aug = _round_up(D + 1, 128)        # neighbor-acc width (+ ones column for degree)
    ones_col = D_aug - 1

    # ---- wrapper-side glue (data-dependent gathers + padding + bf16 streaming casts) ----
    adj = adj_weights[video_nodes]                                   # [N, V]
    self_feats = video_embeddings[video_nodes]                       # [N, D]

    adj_p = jnp.pad(adj, ((0, N_pad - N), (0, V_pad - V))).astype(jnp.bfloat16)
    emb_aug = jnp.pad(video_embeddings, ((0, V_pad - V), (0, D_aug - D)))
    emb_aug = emb_aug.at[:, ones_col].set(1.0).astype(jnp.bfloat16)  # degree via MXU
    self_p = jnp.pad(self_feats, ((0, N_pad - N), (0, D_pad - D)))   # f32

    # PyTorch Linear: y = x @ W.T + b with W: [D, 2D].  Split W.T into halves.
    w_t = w1.T                                                       # [2D, D]
    w_self_p = jnp.pad(w_t[:D, :], ((0, D_pad - D), (0, D_pad - D)))
    w_neigh_p = jnp.pad(w_t[D:, :], ((0, D_aug - D), (0, D_pad - D)))
    b_p = jnp.pad(b1.reshape(1, D), ((0, 0), (0, D_pad - D)))

    grid = (N_pad // TN, V_pad // TV)
    kernel = functools.partial(graph_encoder_kernel, ones_col)

    out = pl.pallas_call(
        kernel,
        out_shape=jax.ShapeDtypeStruct((N_pad, D_pad), jnp.float32),
        grid_spec=pltpu.PrefetchScalarGridSpec(
            num_scalar_prefetch=0,
            grid=grid,
            in_specs=[
                pl.BlockSpec((TN, TV), lambda i, k: (i, k)),      # adj tile (bf16)
                pl.BlockSpec((TV, D_aug), lambda i, k: (k, 0)),   # emb tile (bf16)
                pl.BlockSpec((TN, D_pad), lambda i, k: (i, 0)),   # self feats (resident in k)
                pl.BlockSpec((D_pad, D_pad), lambda i, k: (0, 0)),  # W_self (resident)
                pl.BlockSpec((D_aug, D_pad), lambda i, k: (0, 0)),  # W_neigh (resident)
                pl.BlockSpec((1, D_pad), lambda i, k: (0, 0)),      # bias (resident)
            ],
            out_specs=pl.BlockSpec((TN, D_pad), lambda i, k: (i, 0)),
            scratch_shapes=[pltpu.VMEM((TN, D_aug), jnp.float32)],
        ),
        compiler_params=pltpu.CompilerParams(
            dimension_semantics=("parallel", "arbitrary"),
            vmem_limit_bytes=48 * 1024 * 1024,
        ),
    )(adj_p, emb_aug, self_p, w_self_p, w_neigh_p, b_p)

    return out[:N, :D]


def _reference_forward(video_nodes, video_embeddings, adj_weights, w1, b1):
    """Pure-JAX reference (mirrors PyTorch semantics; adj/emb bf16-cast like the kernel)."""
    adj = adj_weights[video_nodes].astype(jnp.bfloat16).astype(jnp.float32)
    emb = video_embeddings.astype(jnp.bfloat16).astype(jnp.float32)
    self_feats = video_embeddings[video_nodes]
    neigh = (adj @ emb) / jnp.maximum(jnp.sum(adj, axis=-1, keepdims=True), 1e-12)
    combined = jnp.concatenate([self_feats, neigh], axis=1)
    return jax.nn.relu(combined @ w1.T + b1)


if __name__ == "__main__":
    key = jax.random.PRNGKey(0)
    k1, k2, k3, k4, k5, k6 = jax.random.split(key, 6)

    num_videos = 16     # V
    emb_dim = 32        # D
    n_nodes = 8         # batch of video_nodes

    # deterministic synthetic parameters / data
    video_embeddings = jax.random.normal(k1, (num_videos, emb_dim), jnp.float32)

    # synthetic weighted graph (dense adjacency; zeros = no edge; self-loop keeps degree > 0)
    raw_w = jax.random.uniform(k2, (num_videos, num_videos), jnp.float32)
    edge_mask = jax.random.bernoulli(k3, 0.4, (num_videos, num_videos)).astype(jnp.float32)
    adj_weights = raw_w * edge_mask + jnp.eye(num_videos, dtype=jnp.float32)

    # nn.Linear(2 * emb_dim, emb_dim) parameters
    w1 = jax.random.normal(k4, (emb_dim, 2 * emb_dim), jnp.float32) * 0.1
    b1 = jax.random.normal(k5, (emb_dim,), jnp.float32) * 0.1

    video_nodes = jax.random.randint(k6, (n_nodes,), 0, num_videos, dtype=jnp.int32)

    out = graph_encoder_forward(video_nodes, video_embeddings, adj_weights, w1, b1,
                                with_graph=True)
    out = jax.block_until_ready(out)

    ref = _reference_forward(video_nodes, video_embeddings, adj_weights, w1, b1)
    assert out.shape == (n_nodes, emb_dim)
    assert jnp.allclose(out, ref, atol=2e-2, rtol=2e-2), (
        f"max abs err = {jnp.max(jnp.abs(out - ref))}")

    # with_graph=False path (plain lookup)
    out_ng = jax.block_until_ready(
        graph_encoder_forward(video_nodes, video_embeddings, adj_weights, w1, b1,
                              with_graph=False))
    assert jnp.allclose(out_ng, video_embeddings[video_nodes])

    print("KERNEL_OK")
</pallas_src>

<mosaic_0001>
module attributes {stable_mosaic.version = 11 : i64} {
  func.func @graph_encoder_kernel(%arg0: i32, %arg1: i32, %arg2: memref<8x128xbf16, #tpu.memory_space<vmem>>, %arg3: memref<128x128xbf16, #tpu.memory_space<vmem>>, %arg4: memref<8x128xf32, #tpu.memory_space<vmem>>, %arg5: memref<128x128xf32, #tpu.memory_space<vmem>>, %arg6: memref<128x128xf32, #tpu.memory_space<vmem>>, %arg7: memref<1x128xf32, #tpu.memory_space<vmem>>, %arg8: memref<8x128xf32, #tpu.memory_space<vmem>>, %arg9: memref<8x128xf32, #tpu.memory_space<vmem>>) attributes {dimension_semantics = [#tpu.dimension_semantics<parallel>, #tpu.dimension_semantics<arbitrary>], iteration_bounds = array<i64: 1, 1>, scalar_prefetch = 0 : i64, scratch_operands = 1 : i64, tpu.core_type = #tpu.core_type<tc>, window_params = [{transform_indices = @transform_0, window_bounds = array<i64: 8, 128>}, {transform_indices = @transform_1, window_bounds = array<i64: 128, 128>}, {transform_indices = @transform_2, window_bounds = array<i64: 8, 128>}, {pipeline_mode = #tpu.pipeline_mode<synchronous>, transform_indices = @transform_3, window_bounds = array<i64: 128, 128>}, {pipeline_mode = #tpu.pipeline_mode<synchronous>, transform_indices = @transform_4, window_bounds = array<i64: 128, 128>}, {pipeline_mode = #tpu.pipeline_mode<synchronous>, transform_indices = @transform_5, window_bounds = array<i64: 1, 128>}, {transform_indices = @transform_6, window_bounds = array<i64: 8, 128>}]} {
    %c0_i32 = arith.constant 0 : i32
    %0 = arith.cmpi eq, %arg1, %c0_i32 : i32
    %1 = arith.extui %0 : i1 to i32
    %c0_i32_0 = arith.constant 0 : i32
    %2 = arith.cmpi ne, %1, %c0_i32_0 : i32
    scf.if %2 {
      %cst_10 = arith.constant 0.000000e+00 : f32
      %12 = vector.broadcast %cst_10 : f32 to vector<8x128xf32>
      %c0_11 = arith.constant 0 : index
      %c0_12 = arith.constant 0 : index
      %13 = vector.load %arg9[%c0_11, %c0_12] : memref<8x128xf32, #tpu.memory_space<vmem>>, vector<8x128xf32>
      tpu.vector_store %arg9[%c0_11, %c0_12], %12 {strides = array<i32>} : memref<8x128xf32, #tpu.memory_space<vmem>>, vector<8x128xf32>,
    } else {
    }
    %c0 = arith.constant 0 : index
    %c0_1 = arith.constant 0 : index
    %3 = vector.load %arg9[%c0, %c0_1] : memref<8x128xf32, #tpu.memory_space<vmem>>, vector<8x128xf32>
    %c0_2 = arith.constant 0 : index
    %c0_3 = arith.constant 0 : index
    %4 = vector.load %arg2[%c0_2, %c0_3] : memref<8x128xbf16, #tpu.memory_space<vmem>>, vector<8x128xbf16>
    %c0_4 = arith.constant 0 : index
    %c0_5 = arith.constant 0 : index
    %5 = vector.load %arg3[%c0_4, %c0_5] : memref<128x128xbf16, #tpu.memory_space<vmem>>, vector<128x128xbf16>
    %cst = arith.constant dense<0.000000e+00> : vector<8x128xf32>
    %6 = tpu.matmul %4, %5, %cst {dimension_numbers = #tpu.dot_dimension_numbers<[1], [0], [0], [1], [0, 0, 1, 1], [], []>} : vector<8x128xbf16>, vector<128x128xbf16>, vector<8x128xf32> -> vector<8x128xf32>
    %7 = arith.addf %3, %6 : vector<8x128xf32>
    %c0_6 = arith.constant 0 : index
    %c0_7 = arith.constant 0 : index
    %8 = vector.load %arg9[%c0_6, %c0_7] : memref<8x128xf32, #tpu.memory_space<vmem>>, vector<8x128xf32>
    tpu.vector_store %arg9[%c0_6, %c0_7], %7 {strides = array<i32>} : memref<8x128xf32, #tpu.memory_space<vmem>>, vector<8x128xf32>,
    %c0_i32_8 = arith.constant 0 : i32
    %9 = arith.cmpi eq, %arg1, %c0_i32_8 : i32
    %10 = arith.extui %9 : i1 to i32
    %c0_i32_9 = arith.constant 0 : i32
    %11 = arith.cmpi ne, %10, %c0_i32_9 : i32
    scf.if %11 {
      %c0_10 = arith.constant 0 : index
      %c0_11 = arith.constant 0 : index
      %12 = vector.load %arg9[%c0_10, %c0_11] : memref<8x128xf32, #tpu.memory_space<vmem>>, vector<8x128xf32>
      %13 = vector.extract_strided_slice %12 {offsets = [0, 127], sizes = [8, 1], strides = [1, 1]} : vector<8x128xf32> to vector<8x1xf32>
      %cst_12 = arith.constant 9.99999996E-13 : f32
      %14 = vector.broadcast %cst_12 : f32 to vector<8x1xf32>
      %15 = arith.maximumf %13, %14 : vector<8x1xf32>
      %16 = tpu.reciprocal %15 {approx = true} : vector<8x1xf32> -> vector<8x1xf32>
      %17 = vector.broadcast %16 : vector<8x1xf32> to vector<8x128xf32>
      %18 = arith.mulf %12, %17 : vector<8x128xf32>
      %c0_13 = arith.constant 0 : index
      %c0_14 = arith.constant 0 : index
      %19 = vector.load %arg4[%c0_13, %c0_14] : memref<8x128xf32, #tpu.memory_space<vmem>>, vector<8x128xf32>
      %c0_15 = arith.constant 0 : index
      %c0_16 = arith.constant 0 : index
      %20 = vector.load %arg5[%c0_15, %c0_16] : memref<128x128xf32, #tpu.memory_space<vmem>>, vector<128x128xf32>
      %cst_17 = arith.constant dense<0.000000e+00> : vector<8x128xf32>
      %21 = tpu.matmul %19, %20, %cst_17 {dimension_numbers = #tpu.dot_dimension_numbers<[1], [0], [0], [1], [0, 0, 1, 1], [], []>} : vector<8x128xf32>, vector<128x128xf32>, vector<8x128xf32> -> vector<8x128xf32>
      %c0_18 = arith.constant 0 : index
      %c0_19 = arith.constant 0 : index
      %22 = vector.load %arg6[%c0_18, %c0_19] : memref<128x128xf32, #tpu.memory_space<vmem>>, vector<128x128xf32>
      %cst_20 = arith.constant dense<0.000000e+00> : vector<8x128xf32>
      %23 = tpu.matmul %18, %22, %cst_20 {dimension_numbers = #tpu.dot_dimension_numbers<[1], [0], [0], [1], [0, 0, 1, 1], [], []>} : vector<8x128xf32>, vector<128x128xf32>, vector<8x128xf32> -> vector<8x128xf32>
      %24 = arith.addf %21, %23 : vector<8x128xf32>
      %c0_21 = arith.constant 0 : index
      %c0_22 = arith.constant 0 : index
      %25 = vector.load %arg7[%c0_21, %c0_22] : memref<1x128xf32, #tpu.memory_space<vmem>>, vector<1x128xf32>
      %26 = vector.broadcast %25 : vector<1x128xf32> to vector<8x128xf32>
      %27 = arith.addf %24, %26 : vector<8x128xf32>
      %cst_23 = arith.constant 0.000000e+00 : f32
      %28 = vector.broadcast %cst_23 : f32 to vector<8x128xf32>
      %29 = arith.maximumf %27, %28 : vector<8x128xf32>
      %c0_24 = arith.constant 0 : index
      %c0_25 = arith.constant 0 : index
      %30 = vector.load %arg8[%c0_24, %c0_25] : memref<8x128xf32, #tpu.memory_space<vmem>>, vector<8x128xf32>
      tpu.vector_store %arg8[%c0_24, %c0_25], %29 {strides = array<i32>} : memref<8x128xf32, #tpu.memory_space<vmem>>, vector<8x128xf32>,
    } else {
    }
    return
  }
  func.func @transform_0(%arg0: i32, %arg1: i32) -> (i32, i32) {
    %c0_i32 = arith.constant 0 : i32
    return %arg0, %arg1 : i32, i32
  }
  func.func @transform_1(%arg0: i32, %arg1: i32) -> (i32, i32) {
    %c0_i32 = arith.constant 0 : i32
    %c0_i32_0 = arith.constant 0 : i32
    return %arg1, %c0_i32 : i32, i32
  }
  func.func @transform_2(%arg0: i32, %arg1: i32) -> (i32, i32) {
    %c0_i32 = arith.constant 0 : i32
    %c0_i32_0 = arith.constant 0 : i32
    return %arg0, %c0_i32 : i32, i32
  }
  func.func @transform_3(%arg0: i32, %arg1: i32) -> (i32, i32) {
    %c0_i32 = arith.constant 0 : i32
    %c0_i32_0 = arith.constant 0 : i32
    %c0_i32_1 = arith.constant 0 : i32
    return %c0_i32, %c0_i32_0 : i32, i32
  }
  func.func @transform_4(%arg0: i32, %arg1: i32) -> (i32, i32) {
    %c0_i32 = arith.constant 0 : i32
    %c0_i32_0 = arith.constant 0 : i32
    %c0_i32_1 = arith.constant 0 : i32
    return %c0_i32, %c0_i32_0 : i32, i32
  }
  func.func @transform_5(%arg0: i32, %arg1: i32) -> (i32, i32) {
    %c0_i32 = arith.constant 0 : i32
    %c0_i32_0 = arith.constant 0 : i32
    %c0_i32_1 = arith.constant 0 : i32
    return %c0_i32, %c0_i32_0 : i32, i32
  }
  func.func @transform_6(%arg0: i32, %arg1: i32) -> (i32, i32) {
    %c0_i32 = arith.constant 0 : i32
    %c0_i32_0 = arith.constant 0 : i32
    return %arg0, %c0_i32 : i32, i32
  }
}

</mosaic_0001>

<bundles_post_ra>
// kernel: tpu_custom_call.1
= control target key start
LH: loop header
LB: loop body
LE: loop exit
PB: predicated region body
PF: predicated region fallthrough
CT: control target
= control target key end

     0   :  { %11 = vsyncpa [#allocation4], 0  ;;  %s918_s0 = inlined_call_operand.hbm [shape: bf16[8,128], index: 0, kind: input, shape index: {}]   ;;  %s919_s1 = inlined_call_operand.hbm [shape: bf16[128,128], index: 1, kind: input, shape index: {}]   ;;  %s920_s2 = inlined_call_operand.hbm [shape: f32[8,128], index: 2, kind: input, shape index: {}]   ;;  %s921_s3 = inlined_call_operand.hbm [shape: f32[128,128], index: 3, kind: input, shape index: {}]   ;;  %s922_s4 = inlined_call_operand.hbm [shape: f32[128,128], index: 4, kind: input, shape index: {}]   ;;  %s923_s5 = inlined_call_operand.vmem [shape: f32[1,128], index: 5, kind: input, shape index: {}]   ;;  %s924_s6 = inlined_call_operand.hbm [shape: f32[8,128], index: 6, kind: output, shape index: {}]  }
   0x1   :  { %12 = vsyncpa [#allocation7], 0 }
   0x2   :  { %13 = vsyncpa [#allocation10], 0 }
   0x3   :  { %14 = vsyncpa [#allocation5], 0  ;;  %s769_s21 = smov [#allocation6]   ;;  %s629_s25 = scalar_lea.hbm %s919_s1, 1024 }
   0x4   :  { %s30_s22 = sshll.u32 %s769_s21, 4  ;;  %p630_p0 = scmp.ne.s32.totalorder %s919_s1, %s629_s25  ;;  %s31_s22 = int_to_ptr.vmem [resolvable:$true] %s30_s22 }
   0x5   :  { %p633_p1 = scmp.lt.u32.totalorder %s629_s25, %s919_s1 }
   0x7   :  { %p635_p2 = pnand %p633_p1, %p630_p0 }
   0x9   :  { %638 = shalt.err (!%p635_p2)
}
   0xa   :  { %s639_s30 = scalar_lea.vmem %s31_s22, 1024  ;;  %p644_p4 = scmp.lt.s32.totalorder %s31_s22, %s31_s22 }
   0xb   :  { %p640_p3 = scmp.ne.s32.totalorder %s31_s22, %s639_s30  ;;  %p645_p5 = scmp.lt.s32.totalorder %s639_s30, %s639_s30 }
   0xd   :  { %p646_p6 = por %p645_p5, %p644_p4 }
   0xf   :  { %p647_p7 = pnand %p646_p6, %p640_p3 }
  0x11   :  { %650 = shalt.err (!%p647_p7)
}
  0x12   :  { %s770_s7 = smov 64   ;;  %s771_s8 = smov 4  }
  0x13   :  { %36 = dma.hbm_to_vmem [thread:$0]  %s919_s1, 1024, %s31_s22, [#allocation7], %s770_s7, %s770_s7, %s771_s8  }
  0x14   :  { %s772_s11 = smov [#allocation9]   ;;  %s651_s15 = scalar_lea.hbm %s921_s3, 2048 }
  0x15   :  { %s52_s12 = sshll.u32 %s772_s11, 4  ;;  %p652_p8 = scmp.ne.s32.totalorder %s921_s3, %s651_s15  ;;  %s53_s12 = int_to_ptr.vmem [resolvable:$true] %s52_s12 }
  0x16   :  { %p655_p9 = scmp.lt.u32.totalorder %s651_s15, %s921_s3 }
  0x18   :  { %p657_p10 = pnand %p655_p9, %p652_p8 }
  0x1a   :  { %660 = shalt.err (!%p657_p10)
}
  0x1b   :  { %s661_s20 = scalar_lea.vmem %s53_s12, 2048  ;;  %p666_p12 = scmp.lt.s32.totalorder %s53_s12, %s53_s12 }
  0x1c   :  { %p662_p11 = scmp.ne.s32.totalorder %s53_s12, %s661_s20  ;;  %p667_p13 = scmp.lt.s32.totalorder %s661_s20, %s661_s20 }
  0x1e   :  { %p668_p0 = por %p667_p13, %p666_p12 }
  0x20   :  { %p669_p1 = pnand %p668_p0, %p662_p11 }
  0x22   :  { %672 = shalt.err (!%p669_p1)
}
  0x23   :  { %s773_s1 = smov 128   ;;  %s774_s21 = smov 8  }
  0x24   :  { %58 = dma.hbm_to_vmem [thread:$0]  %s921_s3, 2048, %s53_s12, [#allocation10], %s773_s1, %s773_s1, %s774_s21  }
  0x25   :  { %s775_s24 = smov [#allocation3]   ;;  %s776_s26 = smov [#allocation8]  }
  0x26   :  { %s21_s25 = sshll.u32 %s775_s24, 4  ;;  %s43_s27 = sshll.u32 %s776_s26, 4  ;;  %s22_s25 = int_to_ptr.vmem [resolvable:$true] %s21_s25  ;;  %s44_s27 = int_to_ptr.vmem [resolvable:$true] %s43_s27 }
  0x27   :  { %s673_s30 = scalar_lea.hbm %s918_s0, 64 }
  0x28   :  { %p674_p2 = scmp.ne.s32.totalorder %s918_s0, %s673_s30  ;;  %p677_p3 = scmp.lt.u32.totalorder %s673_s30, %s918_s0 }
  0x2a   :  { %p679_p4 = pnand %p677_p3, %p674_p2 }
  0x2c   :  { %682 = shalt.err (!%p679_p4)
}
  0x2d   :  { %s683_s3 = scalar_lea.vmem %s22_s25, 64  ;;  %p688_p6 = scmp.lt.s32.totalorder %s22_s25, %s22_s25 }
  0x2e   :  { %p684_p5 = scmp.ne.s32.totalorder %s22_s25, %s683_s3  ;;  %p689_p7 = scmp.lt.s32.totalorder %s683_s3, %s683_s3 }
  0x30   :  { %p690_p8 = por %p689_p7, %p688_p6 }
  0x32   :  { %p691_p9 = pnand %p690_p8, %p684_p5 }
  0x34   :  { %694 = shalt.err (!%p691_p9)
}
  0x35   :  { %24 = dma.hbm_to_vmem [thread:$0]  %s918_s0, 64, %s22_s25, [#allocation4]  }
  0x36   :  { %s695_s15 = scalar_lea.hbm %s920_s2, 128 }
  0x37   :  { %p696_p10 = scmp.ne.s32.totalorder %s920_s2, %s695_s15  ;;  %p699_p11 = scmp.lt.u32.totalorder %s695_s15, %s920_s2 }
  0x39   :  { %p701_p12 = pnand %p699_p11, %p696_p10 }
  0x3b   :  { %704 = shalt.err (!%p701_p12)
}
  0x3c   :  { %s705_s20 = scalar_lea.vmem %s44_s27, 128  ;;  %p710_p0 = scmp.lt.s32.totalorder %s44_s27, %s44_s27 }
  0x3d   :  { %p706_p13 = scmp.ne.s32.totalorder %s44_s27, %s705_s20  ;;  %p711_p1 = scmp.lt.s32.totalorder %s705_s20, %s705_s20 }
  0x3f   :  { %p712_p2 = por %p711_p1, %p710_p0 }
  0x41   :  { %p713_p3 = pnand %p712_p2, %p706_p13 }
  0x43   :  { %716 = shalt.err (!%p713_p3)
}
  0x44   :  { %46 = dma.hbm_to_vmem [thread:$0]  %s920_s2, 128, %s44_s27, [#allocation7]  }
  0x45   :  { %s777_s23 = smov [#allocation11]   ;;  %s717_s28 = scalar_lea.hbm %s922_s4, 2048 }
  0x46   :  { %s64_s24 = sshll.u32 %s777_s23, 4  ;;  %p718_p4 = scmp.ne.s32.totalorder %s922_s4, %s717_s28  ;;  %s65_s24 = int_to_ptr.vmem [resolvable:$true] %s64_s24 }
  0x47   :  { %p721_p5 = scmp.lt.u32.totalorder %s717_s28, %s922_s4 }
  0x49   :  { %p723_p6 = pnand %p721_p5, %p718_p4 }
  0x4b   :  { %726 = shalt.err (!%p723_p6)
}
  0x4c   :  { %s727_s9 = scalar_lea.vmem %s65_s24, 2048  ;;  %p732_p8 = scmp.lt.s32.totalorder %s65_s24, %s65_s24 }
  0x4d   :  { %p728_p7 = scmp.ne.s32.totalorder %s65_s24, %s727_s9  ;;  %p733_p9 = scmp.lt.s32.totalorder %s727_s9, %s727_s9 }
  0x4f   :  { %p734_p10 = por %p733_p9, %p732_p8 }
  0x51   :  { %p735_p11 = pnand %p734_p10, %p728_p7 }
  0x53   :  { %738 = shalt.err (!%p735_p11)
}
  0x54   :  { %70 = dma.hbm_to_vmem [thread:$0]  %s922_s4, 2048, %s65_s24, [#allocation10], %s773_s1, %s773_s1, %s774_s21  }
  0x55   :  { %761 = dma.done.wait [#allocation4], 64  }
  0x56   :  { %762 = vsyncadd [#allocation4], 4294967232 }
  0x57   :  { %763 = dma.done.wait [#allocation7], 1152  }
  0x58   :  { %764 = vsyncadd [#allocation7], 4294966144 }
  0x59   :  { %765 = dma.done.wait [#allocation10], 4096  }
  0x5a   :  { %766 = vsyncadd [#allocation10], 4294963200  ;;  %v778_v0 = vmov 0.0   ;;  %vm779_vm0 = vmmov 0   ;;  %v619_v1 = vld [vmem:[#allocation6] sm:$0xff]   ;;  %v620_v2 = vld [vmem:[#allocation6 + $0x8] sm:$0xff]  }
  0x5b   :  { %466 = vmatprep.subr.bf16.mxu0 %v778_v0  ;;  %482 = vmatprep.mubr.msk.bf16.mxu0 %vm779_vm0, %v778_v0  ;;  %v621_v3 = vld [vmem:[#allocation6 + $0x10] sm:$0xff]   ;;  %v622_v4 = vld [vmem:[#allocation6 + $0x18] sm:$0xff]   ;;  %v623_v5 = vld [vmem:[#allocation6 + $0x20] sm:$0xff]   ;;  %v780_v10 = vmov 127   ;;  %v781_v14 = vmov 0.0|0.0   ;;  %s782_s21 = smov [#allocation12]  }
  0x5c   :  { %518 = vmatprep.mubr.msk.f32.mxu1 %vm779_vm0, %v778_v0  ;;  %467 = vmatpush3.bf16.msra.mxu0 %v619_v1  ;;  %v624_v6 = vld [vmem:[#allocation6 + $0x28] sm:$0xff]   ;;  %v625_v7 = vld [vmem:[#allocation6 + $0x30] sm:$0xff]   ;;  %v626_v8 = vld [vmem:[#allocation6 + $0x38] sm:$0xff]   ;;  %s403_s10 = sshll.u32 %s782_s21, 4  ;;  %s404_s10 = int_to_ptr.vmem [resolvable:$true] %s403_s10 }
  0x5d   :  { %468 = vmatprep.subr.bf16.mxu0 %v778_v0  ;;  %v95_v9 = vld [vmem:[#allocation3] sm:$0xf]  ;;  %618 = vset.pattern.permute.xlu0 %v780_v10  ;;  %v215_v11 = vld [vmem:[#allocation9] sm:$0xff]  ;;  %v216_v12 = vld [vmem:[#allocation9 + $0x8] sm:$0xff]  ;;  %s739_s3 = scalar_lea.vmem %s404_s10, 128  ;;  %p744_p13 = scmp.lt.s32.totalorder %s404_s10, %s404_s10 }
  0x5e   :  { %v231_v13 = vld [vmem:[#allocation11] sm:$0xff]  ;;  %556 = vmatprep.subr.bf16.mxu1 %v781_v14  ;;  %v581_v15 = vpack.c.bf16 %v216_v12, %v215_v11  ;;  %v232_v16 = vld [vmem:[#allocation11 + $0x8] sm:$0xff]  ;;  %v217_v17 = vld [vmem:[#allocation9 + $0x10] sm:$0xff]  ;;  %p740_p12 = scmp.ne.s32.totalorder %s404_s10, %s739_s3  ;;  %p745_p0 = scmp.lt.s32.totalorder %s739_s3, %s739_s3 }
  0x5f   :  { %v218_v18 = vld [vmem:[#allocation9 + $0x18] sm:$0xff]  ;;  %v557_v19 = vpack.c.bf16 %v232_v16, %v231_v13  ;;  %v233_v20 = vld [vmem:[#allocation11 + $0x10] sm:$0xff]  ;;  %v219_v24 = vld [vmem:[#allocation9 + $0x20] sm:$0xff] }
  0x60   :  { %469 = vmatpush3.bf16.msra.mxu0 %v620_v2  ;;  %v234_v21 = vld [vmem:[#allocation11 + $0x18] sm:$0xff]  ;;  %v584_v22 = vpack.c.bf16 %v218_v18, %v217_v17  ;;  %v220_v25 = vld [vmem:[#allocation9 + $0x28] sm:$0xff]  ;;  %v235_v26 = vld [vmem:[#allocation11 + $0x20] sm:$0xff]  ;;  %p746_p1 = por %p745_p0, %p744_p13 }
  0x61   :  { %470 = vmatprep.subr.bf16.mxu0 %v778_v0  ;;  %558 = vmatpush3.bf16.msra.mxu1 %v557_v19  ;;  %v560_v23 = vpack.c.bf16 %v234_v21, %v233_v20  ;;  %v236_v27 = vld [vmem:[#allocation11 + $0x28] sm:$0xff]  ;;  %v587_v28 = vpack.c.bf16 %v220_v25, %v219_v24  ;;  %v221_v30 = vld [vmem:[#allocation9 + $0x30] sm:$0xff]  ;;  %v222_v31 = vld [vmem:[#allocation9 + $0x38] sm:$0xff] }
  0x62   :  { %559 = vmatprep.subr.bf16.mxu1 %v781_v14  ;;  %v563_v29 = vpack.c.bf16 %v236_v27, %v235_v26  ;;  %v237_v32 = vld [vmem:[#allocation11 + $0x30] sm:$0xff]  ;;  %v238_v33 = vld [vmem:[#allocation11 + $0x38] sm:$0xff]  ;;  %v590_v34 = vpack.c.bf16 %v222_v31, %v221_v30  ;;  %v223_v36 = vld [vmem:[#allocation9 + $0x40] sm:$0xff]  ;;  %p747_p2 = pnand %p746_p1, %p740_p12 }
  0x63   :  { %v566_v35 = vpack.c.bf16 %v238_v33, %v237_v32  ;;  %v224_v37 = vld [vmem:[#allocation9 + $0x48] sm:$0xff]  ;;  %v239_v38 = vld [vmem:[#allocation11 + $0x40] sm:$0xff]  ;;  %v225_v42 = vld [vmem:[#allocation9 + $0x50] sm:$0xff] }
  0x64   :  { %471 = vmatpush3.bf16.msra.mxu0 %v621_v3  ;;  %v240_v39 = vld [vmem:[#allocation11 + $0x48] sm:$0xff]  ;;  %v593_v40 = vpack.c.bf16 %v224_v37, %v223_v36  ;;  %v226_v43 = vld [vmem:[#allocation9 + $0x58] sm:$0xff]  ;;  %v241_v44 = vld [vmem:[#allocation11 + $0x50] sm:$0xff] }
  0x65   :  { %472 = vmatprep.subr.bf16.mxu0 %v778_v0  ;;  %561 = vmatpush3.bf16.msra.mxu1 %v560_v23  ;;  %v569_v41 = vpack.c.bf16 %v240_v39, %v239_v38  ;;  %v242_v45 = vld [vmem:[#allocation11 + $0x58] sm:$0xff]  ;;  %v596_v46 = vpack.c.bf16 %v226_v43, %v225_v42  ;;  %v227_v48 = vld [vmem:[#allocation9 + $0x60] sm:$0xff]  ;;  %v228_v49 = vld [vmem:[#allocation9 + $0x68] sm:$0xff] }
  0x66   :  { %562 = vmatprep.subr.bf16.mxu1 %v781_v14  ;;  %v572_v47 = vpack.c.bf16 %v242_v45, %v241_v44  ;;  %v243_v50 = vld [vmem:[#allocation11 + $0x60] sm:$0xff]  ;;  %v244_v51 = vld [vmem:[#allocation11 + $0x68] sm:$0xff]  ;;  %v599_v52 = vpack.c.bf16 %v228_v49, %v227_v48  ;;  %v229_v54 = vld [vmem:[#allocation9 + $0x70] sm:$0xff] }
  0x67   :  { %v575_v53 = vpack.c.bf16 %v244_v51, %v243_v50  ;;  %v230_v55 = vld [vmem:[#allocation9 + $0x78] sm:$0xff]  ;;  %v245_v56 = vld [vmem:[#allocation11 + $0x70] sm:$0xff] }
  0x68   :  { %473 = vmatpush3.bf16.msra.mxu0 %v622_v4  ;;  %v246_v57 = vld [vmem:[#allocation11 + $0x78] sm:$0xff]  ;;  %v602_v58 = vpack.c.bf16 %v230_v55, %v229_v54 }
  0x69   :  { %474 = vmatprep.subr.bf16.mxu0 %v778_v0  ;;  %564 = vmatpush3.bf16.msra.mxu1 %v563_v29  ;;  %v578_v59 = vpack.c.bf16 %v246_v57, %v245_v56  ;;  %v214_v2 = vld [vmem:[#allocation8] sm:$0xff] }
  0x6a   :  { %565 = vmatprep.subr.bf16.mxu1 %v781_v14 }
  0x6c   :  { %475 = vmatpush3.bf16.msra.mxu0 %v623_v5 }
  0x6d   :  { %476 = vmatprep.subr.bf16.mxu0 %v778_v0  ;;  %567 = vmatpush3.bf16.msra.mxu1 %v566_v35 }
  0x6e   :  { %568 = vmatprep.subr.bf16.mxu1 %v781_v14 }
  0x70   :  { %477 = vmatpush3.bf16.msra.mxu0 %v624_v6 }
  0x71   :  { %478 = vmatprep.subr.bf16.mxu0 %v778_v0  ;;  %570 = vmatpush3.bf16.msra.mxu1 %v569_v41 }
  0x72   :  { %571 = vmatprep.subr.bf16.mxu1 %v781_v14 }
  0x74   :  { %479 = vmatpush3.bf16.msra.mxu0 %v625_v7 }
  0x75   :  { %480 = vmatprep.subr.bf16.mxu0 %v778_v0  ;;  %573 = vmatpush3.bf16.msra.mxu1 %v572_v47 }
  0x76   :  { %574 = vmatprep.subr.bf16.mxu1 %v781_v14 }
  0x78   :  { %481 = vmatpush3.bf16.msra.mxu0 %v626_v8  ;;  %v422_v8 = vld [vmem:[%s923_s5] ss:$0 sm:$0xff] }
  0x79   :  { %580 = vmatprep.subr.bf16.mxu0 %v781_v14  ;;  %576 = vmatpush3.bf16.msra.mxu1 %v575_v53 }
  0x7a   :  { %577 = vmatprep.subr.bf16.mxu1 %v781_v14 }
  0x7b   :  { %483 = vmatmul.mubr.bf16.vlgmr.msra.gmra.mrb[0].mxu0 %v95_v9 }
  0x7c   :  { %553 = vmatprep.mubr.msk.f32.mxu0 %vm779_vm0, %v778_v0  ;;  %582 = vmatpush3.bf16.msra.mxu0 %v581_v15 }
  0x7d   :  { %583 = vmatprep.subr.bf16.mxu0 %v781_v14  ;;  %579 = vmatpush3.bf16.msra.mxu1 %v578_v59 }
  0x80   :  { %585 = vmatpush3.bf16.msra.mxu0 %v584_v22 }
  0x81   :  { %586 = vmatprep.subr.bf16.mxu0 %v781_v14 }
  0x84   :  { %588 = vmatpush3.bf16.msra.mxu0 %v587_v28 }
  0x85   :  { %589 = vmatprep.subr.bf16.mxu0 %v781_v14 }
  0x88   :  { %591 = vmatpush3.bf16.msra.mxu0 %v590_v34 }
  0x89   :  { %592 = vmatprep.subr.bf16.mxu0 %v781_v14 }
  0x8c   :  { %594 = vmatpush3.bf16.msra.mxu0 %v593_v40 }
  0x8d   :  { %595 = vmatprep.subr.bf16.mxu0 %v781_v14 }
  0x90   :  { %597 = vmatpush3.bf16.msra.mxu0 %v596_v46 }
  0x91   :  { %598 = vmatprep.subr.bf16.mxu0 %v781_v14 }
  0x94   :  { %600 = vmatpush3.bf16.msra.mxu0 %v599_v52 }
  0x95   :  { %601 = vmatprep.subr.bf16.mxu0 %v781_v14 }
  0x98   :  { %603 = vmatpush3.bf16.msra.mxu0 %v602_v58 }
  0x9b   :  { %554 = vmatmul.mubr.f32.vlgmr.msra.gmra.mrb[4].mxu0 %v214_v2 }
 0x14e   :  { %v194_v60 = vpop.f32.mrb[0].mxu0 }
 0x14f   :  { %v206_v61 = vmax.f32 %v194_v60, 1e-12  ;;  %v484_v62 = vpop.f32.mrb[1].mxu0 }
 0x150   :  { %v197_v63 = vpop.f32.mrb[2].mxu0 }
 0x151   :  { %627 = vrcp.f32 %v206_v61  ;;  %v485_v0 = vpop.f32.mrb[3].mxu0 }
 0x15b   :  { %v628_v1 = vpop.eup %627 }
 0x15c   :  { %210 = vperm.xlu0 %618, %v628_v1  }
 0x16e   :  { %v383_v5 = vpop.f32.mrb[4].mxu0 }
 0x16f   :  { %v555_v6 = vpop.f32.mrb[5].mxu0 }
 0x1db   :  { %v211_v3 = vpop.permute.xlu0 %210 }
 0x1dc   :  { %v213_v4 = vmul.f32 %v211_v3, %v194_v60 }
 0x1de   :  { %519 = vmatmul.mubr.f32.vlgmr.msra.gmra.mrb[0].mxu1 %v213_v4 }
 0x2b1   :  { %v313_v7 = vpop.f32.mrb[0].mxu1 }
 0x2b2   :  { %v384_v9 = vadd.f32 %v383_v5, %v313_v7  ;;  %v520_v10 = vpop.f32.mrb[1].mxu1 }
 0x2b4   :  { %v394_v11 = vadd.f32 %v422_v8, %v384_v9 }
 0x2b6   :  { %v395_v12 = vmax.f32 %v394_v11, 0.0 }
 0x2b8   :  { %396 = vst [vmem:[#allocation12] sm:$0xff] %v395_v12 }
 0x2b9   :  { %750 = shalt.err (!%p747_p2)
}
 0x2ba   :  { %s751_s13 = scalar_lea.hbm %s924_s6, 128 }
 0x2bb   :  { %p752_p3 = scmp.ne.s32.totalorder %s924_s6, %s751_s13  ;;  %p755_p4 = scmp.lt.u32.totalorder %s751_s13, %s924_s6 }
 0x2bd   :  { %p757_p5 = pnand %p755_p4, %p752_p3 }
 0x2bf   :  { %760 = shalt.err (!%p757_p5)
}
 0x2c0   :  { %406 = dma.vmem_to_hbm [thread:$0]  %s404_s10, 128, %s924_s6, [#allocation5]  }
 0x2c1   :  { %767 = dma.done.wait [#allocation5], 128  }
 0x2c2   :  { %768 = vsyncadd [#allocation5], 4294967168 }
 0x2c3   :  { %410 = vsyncpa [#allocation4], 1 }
 0x2c4   :  { %411 = vsyncpa [#allocation7], 1 }
 0x2c5   :  { %412 = vsyncpa [#allocation10], 1 }
 0x2c6   :  { %413 = vsyncpa [#allocation5], 1 }

</bundles_post_ra>
